<compile_context>
chip_gen: v5e
topology: v5e:2x2
jax: 0.10.0
libtpu: 0.0.40
codegen_flags: <defaults>
</compile_context>

<pallas_src>
import functools

import jax
import jax.numpy as jnp
from jax.experimental import pallas as pl
from jax.experimental.pallas import tpu as pltpu

_EPS = 1e-5                      # PyTorch BatchNorm1d default eps
_VMEM_LIMIT = 32 * 1024 * 1024   # safe on v5e/v6e/v7x


def _pick_tile_n(n: int) -> int:
    """Largest lane-aligned column tile (<=2048) leaving >=2 grid steps."""
    if n <= 128:
        return n                 # single full-extent block (always legal)
    t = 2048
    while t > 128 and 2 * t > n:
        t //= 2
    return t                     # multiple of 128


# --------------------------------------------------------------------------- #
# Kernels (transposed layout: activations are (features, TILE_N))
# --------------------------------------------------------------------------- #
def _stats1_kernel(x_ref, w_ref, b_ref, sum_ref, ssq_ref, *, n_total, tile_n):
    """Accumulate sum / sum-of-squares of h1 = W1 @ x + b1 over all columns."""
    i = pl.program_id(0)

    @pl.when(i == 0)
    def _():
        sum_ref[...] = jnp.zeros_like(sum_ref)
        ssq_ref[...] = jnp.zeros_like(ssq_ref)

    # (Fi, C) @ (C, T) -> (Fi, T); N on lanes (lane-dense), tiny contraction.
    h = jnp.dot(w_ref[...], x_ref[...],
                preferred_element_type=jnp.float32) + b_ref[...]

    # Mask columns past N (ragged last tile). Garbage stays column-confined.
    col = i * tile_n + jax.lax.broadcasted_iota(jnp.int32, (1, tile_n), 1)
    hm = jnp.where(col < n_total, h, 0.0)

    sum_ref[...] += jnp.sum(hm, axis=1, keepdims=True)
    ssq_ref[...] += jnp.sum(hm * hm, axis=1, keepdims=True)


def _stats2_kernel(x_ref, w1_ref, b1_ref, w2_ref, b2_ref,
                   sum_ref, ssq_ref, *, n_total, tile_n):
    """Accumulate stats of h2 = W2 @ relu(BN1-folded Linear1) + b2."""
    i = pl.program_id(0)

    @pl.when(i == 0)
    def _():
        sum_ref[...] = jnp.zeros_like(sum_ref)
        ssq_ref[...] = jnp.zeros_like(ssq_ref)

    h1 = jnp.maximum(
        jnp.dot(w1_ref[...], x_ref[...],
                preferred_element_type=jnp.float32) + b1_ref[...], 0.0)
    h2 = jnp.dot(w2_ref[...], h1,
                 preferred_element_type=jnp.float32) + b2_ref[...]

    col = i * tile_n + jax.lax.broadcasted_iota(jnp.int32, (1, tile_n), 1)
    hm = jnp.where(col < n_total, h2, 0.0)

    sum_ref[...] += jnp.sum(hm, axis=1, keepdims=True)
    ssq_ref[...] += jnp.sum(hm * hm, axis=1, keepdims=True)


def _final_kernel(x_ref, w1_ref, b1_ref, w2_ref, b2_ref, o_ref):
    """Fully fused Linear1+BN1+ReLU+Linear2+BN2+ReLU (BN folded into weights)."""
    h1 = jnp.maximum(
        jnp.dot(w1_ref[...], x_ref[...],
                preferred_element_type=jnp.float32) + b1_ref[...], 0.0)
    h2 = jnp.dot(w2_ref[...], h1,
                 preferred_element_type=jnp.float32) + b2_ref[...]
    o_ref[...] = jnp.maximum(h2, 0.0)   # (Fo, TILE_N) lane-dense store


# --------------------------------------------------------------------------- #
# Wrapper
# --------------------------------------------------------------------------- #
def feature_extraction_forward(x, params):
    """x: (B, in_features, H, W) f32 -> ((B, out_features, H, W) f32, None)."""
    B, C, H, W = x.shape
    N = B * H * W
    Fi = params["w1"].shape[0]   # interm features
    Fo = params["w2"].shape[0]   # out features

    # Exact torch semantics: raw NCHW reshape to (B*H*W, C) (NOT a permute),
    # then transpose so N lives on the lane axis inside the kernels.
    xT = jnp.reshape(x, (N, C)).T                        # (C, N)

    tile = _pick_tile_n(N)
    grid = (pl.cdiv(N, tile),)

    w1 = params["w1"]                                    # (Fi, C)  torch layout
    b1 = params["b1"].reshape(Fi, 1)
    g1 = params["g1"].reshape(Fi, 1)
    bt1 = params["bt1"].reshape(Fi, 1)
    w2 = params["w2"]                                    # (Fo, Fi)
    b2 = params["b2"].reshape(Fo, 1)
    g2 = params["g2"].reshape(Fo, 1)
    bt2 = params["bt2"].reshape(Fo, 1)

    x_spec = pl.BlockSpec((C, tile), lambda i: (0, i))

    def const_spec(a):           # full array, resident across the whole grid
        return pl.BlockSpec(a.shape, lambda i: (0, 0))

    def stat_out(f):
        return (pl.BlockSpec((f, 1), lambda i: (0, 0)),
                pl.BlockSpec((f, 1), lambda i: (0, 0)))

    reduce_cp = pltpu.CompilerParams(
        dimension_semantics=("arbitrary",), vmem_limit_bytes=_VMEM_LIMIT)
    parallel_cp = pltpu.CompilerParams(
        dimension_semantics=("parallel",), vmem_limit_bytes=_VMEM_LIMIT)

    # ---- pass 1: batch statistics of Linear1 output ------------------------
    sum1, ssq1 = pl.pallas_call(
        functools.partial(_stats1_kernel, n_total=N, tile_n=tile),
        grid=grid,
        in_specs=[x_spec, const_spec(w1), const_spec(b1)],
        out_specs=stat_out(Fi),
        out_shape=(jax.ShapeDtypeStruct((Fi, 1), jnp.float32),
                   jax.ShapeDtypeStruct((Fi, 1), jnp.float32)),
        compiler_params=reduce_cp,
    )(xT, w1, b1)

    mu1 = sum1 / N
    var1 = jnp.maximum(ssq1 / N - mu1 * mu1, 0.0)        # biased variance
    s1 = g1 * jax.lax.rsqrt(var1 + _EPS)
    w1e = w1 * s1                                        # fold BN1 into Linear1
    b1e = s1 * (b1 - mu1) + bt1

    # ---- pass 2: batch statistics of Linear2 output ------------------------
    sum2, ssq2 = pl.pallas_call(
        functools.partial(_stats2_kernel, n_total=N, tile_n=tile),
        grid=grid,
        in_specs=[x_spec, const_spec(w1e), const_spec(b1e),
                  const_spec(w2), const_spec(b2)],
        out_specs=stat_out(Fo),
        out_shape=(jax.ShapeDtypeStruct((Fo, 1), jnp.float32),
                   jax.ShapeDtypeStruct((Fo, 1), jnp.float32)),
        compiler_params=reduce_cp,
    )(xT, w1e, b1e, w2, b2)

    mu2 = sum2 / N
    var2 = jnp.maximum(ssq2 / N - mu2 * mu2, 0.0)
    s2 = g2 * jax.lax.rsqrt(var2 + _EPS)
    w2e = w2 * s2                                        # fold BN2 into Linear2
    b2e = s2 * (b2 - mu2) + bt2

    # ---- pass 3: fused forward, lane-dense (Fo, N) output -------------------
    outT = pl.pallas_call(
        _final_kernel,
        grid=grid,
        in_specs=[x_spec, const_spec(w1e), const_spec(b1e),
                  const_spec(w2e), const_spec(b2e)],
        out_specs=pl.BlockSpec((Fo, tile), lambda i: (0, i)),
        out_shape=jax.ShapeDtypeStruct((Fo, N), jnp.float32),
        compiler_params=parallel_cp,
    )(xT, w1e, b1e, w2e, b2e)

    # Transpose back and raw-reshape, matching torch .view(B, Fo, H, W).
    out = jnp.reshape(outT.T, (B, Fo, H, W))
    return out, None


# --------------------------------------------------------------------------- #
# Parameters & pure-JAX reference
# --------------------------------------------------------------------------- #
def make_feature_extraction_params(in_features: int, out_features: int, key):
    """Synthetic params in PyTorch layout: Linear weight is (out, in)."""
    interm = max(in_features // 2, out_features)
    k1, k2, k3, k4, k5, k6, k7, k8 = jax.random.split(key, 8)
    params = {
        "w1": jax.random.normal(k1, (interm, in_features), jnp.float32)
              / jnp.sqrt(in_features),
        "b1": jax.random.normal(k2, (interm,), jnp.float32) * 0.1,
        "g1": 1.0 + 0.1 * jax.random.normal(k5, (interm,), jnp.float32),
        "bt1": 0.1 * jax.random.normal(k6, (interm,), jnp.float32),
        "w2": jax.random.normal(k3, (out_features, interm), jnp.float32)
              / jnp.sqrt(interm),
        "b2": jax.random.normal(k4, (out_features,), jnp.float32) * 0.1,
        "g2": 1.0 + 0.1 * jax.random.normal(k7, (out_features,), jnp.float32),
        "bt2": 0.1 * jax.random.normal(k8, (out_features,), jnp.float32),
    }
    return params, interm


def _reference_forward(x, params):
    """Pure-JAX reference (train-mode BN, biased variance)."""
    B, C, H, W = x.shape
    Fo = params["w2"].shape[0]
    h = jnp.reshape(x, (B * H * W, C))
    h = h @ params["w1"].T + params["b1"]
    mu, var = jnp.mean(h, 0), jnp.var(h, 0)
    h = (h - mu) / jnp.sqrt(var + _EPS) * params["g1"] + params["bt1"]
    h = jnp.maximum(h, 0.0)
    h = h @ params["w2"].T + params["b2"]
    mu, var = jnp.mean(h, 0), jnp.var(h, 0)
    h = (h - mu) / jnp.sqrt(var + _EPS) * params["g2"] + params["bt2"]
    h = jnp.maximum(h, 0.0)
    return jnp.reshape(h, (B, Fo, H, W))


if __name__ == "__main__":
    key = jax.random.PRNGKey(0)
    kx, kp = jax.random.split(key)

    B, in_features, H, W = 2, 4, 16, 16
    out_features = 8                      # interm = max(4 // 2, 8) = 8

    x = jax.random.normal(kx, (B, in_features, H, W), jnp.float32)
    params, interm = make_feature_extraction_params(in_features, out_features, kp)

    fwd = jax.jit(feature_extraction_forward)
    out, aux = fwd(x, params)
    out = jax.block_until_ready(out)
    assert aux is None
    assert out.shape == (B, out_features, H, W), out.shape

    ref = jax.block_until_ready(_reference_forward(x, params))
    max_err = float(jnp.max(jnp.abs(out - ref)))
    assert max_err < 5e-4, max_err

    print("KERNEL_OK")
</pallas_src>

<mosaic_0001>
module attributes {stable_mosaic.version = 11 : i64} {
  func.func @_stats1_kernel(%arg0: i32, %arg1: memref<4x256xf32, #tpu.memory_space<vmem>>, %arg2: memref<8x4xf32, #tpu.memory_space<vmem>>, %arg3: memref<8x1xf32, #tpu.memory_space<vmem>>, %arg4: memref<8x1xf32, #tpu.memory_space<vmem>>, %arg5: memref<8x1xf32, #tpu.memory_space<vmem>>) attributes {dimension_semantics = [#tpu.dimension_semantics<arbitrary>], iteration_bounds = array<i64: 2>, scalar_prefetch = 0 : i64, scratch_operands = 0 : i64, tpu.core_type = #tpu.core_type<tc>, window_params = [{transform_indices = @transform_0, window_bounds = array<i64: 4, 256>}, {pipeline_mode = #tpu.pipeline_mode<synchronous>, transform_indices = @transform_1, window_bounds = array<i64: 8, 4>}, {pipeline_mode = #tpu.pipeline_mode<synchronous>, transform_indices = @transform_2, window_bounds = array<i64: 8, 1>}, {pipeline_mode = #tpu.pipeline_mode<synchronous>, transform_indices = @transform_3, window_bounds = array<i64: 8, 1>}, {pipeline_mode = #tpu.pipeline_mode<synchronous>, transform_indices = @transform_4, window_bounds = array<i64: 8, 1>}]} {
    %c0_i32 = arith.constant 0 : i32
    %0 = arith.cmpi eq, %arg0, %c0_i32 : i32
    %1 = arith.extui %0 : i1 to i32
    %c0_i32_0 = arith.constant 0 : i32
    %2 = arith.cmpi ne, %1, %c0_i32_0 : i32
    scf.if %2 {
      %cst_17 = arith.constant 0.000000e+00 : f32
      %30 = vector.broadcast %cst_17 : f32 to vector<8x1xf32>
      %c0_18 = arith.constant 0 : index
      %c0_19 = arith.constant 0 : index
      %31 = vector.load %arg4[%c0_18, %c0_19] : memref<8x1xf32, #tpu.memory_space<vmem>>, vector<8x1xf32>
      tpu.vector_store %arg4[%c0_18, %c0_19], %30 {strides = array<i32>} : memref<8x1xf32, #tpu.memory_space<vmem>>, vector<8x1xf32>,
      %cst_20 = arith.constant 0.000000e+00 : f32
      %32 = vector.broadcast %cst_20 : f32 to vector<8x1xf32>
      %c0_21 = arith.constant 0 : index
      %c0_22 = arith.constant 0 : index
      %33 = vector.load %arg5[%c0_21, %c0_22] : memref<8x1xf32, #tpu.memory_space<vmem>>, vector<8x1xf32>
      tpu.vector_store %arg5[%c0_21, %c0_22], %32 {strides = array<i32>} : memref<8x1xf32, #tpu.memory_space<vmem>>, vector<8x1xf32>,
    } else {
    }
    %c0 = arith.constant 0 : index
    %c0_1 = arith.constant 0 : index
    %3 = vector.load %arg2[%c0, %c0_1] : memref<8x4xf32, #tpu.memory_space<vmem>>, vector<8x4xf32>
    %c0_2 = arith.constant 0 : index
    %c0_3 = arith.constant 0 : index
    %4 = vector.load %arg1[%c0_2, %c0_3] : memref<4x256xf32, #tpu.memory_space<vmem>>, vector<4x256xf32>
    %cst = arith.constant dense<0.000000e+00> : vector<8x256xf32>
    %5 = tpu.matmul %3, %4, %cst {dimension_numbers = #tpu.dot_dimension_numbers<[1], [0], [0], [1], [0, 0, 1, 1], [], []>} : vector<8x4xf32>, vector<4x256xf32>, vector<8x256xf32> -> vector<8x256xf32>
    %c0_4 = arith.constant 0 : index
    %c0_5 = arith.constant 0 : index
    %6 = vector.load %arg3[%c0_4, %c0_5] : memref<8x1xf32, #tpu.memory_space<vmem>>, vector<8x1xf32>
    %7 = vector.broadcast %6 : vector<8x1xf32> to vector<8x256xf32>
    %8 = arith.addf %5, %7 : vector<8x256xf32>
    %c256_i32 = arith.constant 256 : i32
    %9 = arith.muli %arg0, %c256_i32 : i32
    %10 = tpu.iota {dimensions = array<i32: 1>} : vector<1x256xi32>
    %11 = vector.broadcast %9 : i32 to vector<1x256xi32>
    %12 = arith.addi %11, %10 : vector<1x256xi32>
    %c512_i32 = arith.constant 512 : i32
    %13 = vector.broadcast %c512_i32 : i32 to vector<1x256xi32>
    %14 = arith.cmpi slt, %12, %13 : vector<1x256xi32>
    %cst_6 = arith.constant 0.000000e+00 : f32
    %15 = vector.shape_cast %14 : vector<1x256xi1> to vector<1x256xi1>
    %16 = vector.broadcast %15 : vector<1x256xi1> to vector<8x256xi1>
    %17 = vector.broadcast %cst_6 : f32 to vector<8x256xf32>
    %18 = arith.select %16, %8, %17 : vector<8x256xi1>, vector<8x256xf32>
    %c0_7 = arith.constant 0 : index
    %c0_8 = arith.constant 0 : index
    %19 = vector.load %arg4[%c0_7, %c0_8] : memref<8x1xf32, #tpu.memory_space<vmem>>, vector<8x1xf32>
    %cst_9 = arith.constant dense<0.000000e+00> : vector<8xf32>
    %20 = vector.multi_reduction <add>, %18, %cst_9 [1] : vector<8x256xf32> to vector<8xf32>
    %21 = vector.shape_cast %20 : vector<8xf32> to vector<8x1xf32>
    %22 = arith.addf %19, %21 : vector<8x1xf32>
    %c0_10 = arith.constant 0 : index
    %c0_11 = arith.constant 0 : index
    %23 = vector.load %arg4[%c0_10, %c0_11] : memref<8x1xf32, #tpu.memory_space<vmem>>, vector<8x1xf32>
    tpu.vector_store %arg4[%c0_10, %c0_11], %22 {strides = array<i32>} : memref<8x1xf32, #tpu.memory_space<vmem>>, vector<8x1xf32>,
    %c0_12 = arith.constant 0 : index
    %c0_13 = arith.constant 0 : index
    %24 = vector.load %arg5[%c0_12, %c0_13] : memref<8x1xf32, #tpu.memory_space<vmem>>, vector<8x1xf32>
    %25 = arith.mulf %18, %18 : vector<8x256xf32>
    %cst_14 = arith.constant dense<0.000000e+00> : vector<8xf32>
    %26 = vector.multi_reduction <add>, %25, %cst_14 [1] : vector<8x256xf32> to vector<8xf32>
    %27 = vector.shape_cast %26 : vector<8xf32> to vector<8x1xf32>
    %28 = arith.addf %24, %27 : vector<8x1xf32>
    %c0_15 = arith.constant 0 : index
    %c0_16 = arith.constant 0 : index
    %29 = vector.load %arg5[%c0_15, %c0_16] : memref<8x1xf32, #tpu.memory_space<vmem>>, vector<8x1xf32>
    tpu.vector_store %arg5[%c0_15, %c0_16], %28 {strides = array<i32>} : memref<8x1xf32, #tpu.memory_space<vmem>>, vector<8x1xf32>,
    return
  }
  func.func @transform_0(%arg0: i32) -> (i32, i32) {
    %c0_i32 = arith.constant 0 : i32
    %c0_i32_0 = arith.constant 0 : i32
    return %c0_i32, %arg0 : i32, i32
  }
  func.func @transform_1(%arg0: i32) -> (i32, i32) {
    %c0_i32 = arith.constant 0 : i32
    %c0_i32_0 = arith.constant 0 : i32
    %c0_i32_1 = arith.constant 0 : i32
    return %c0_i32, %c0_i32_0 : i32, i32
  }
  func.func @transform_2(%arg0: i32) -> (i32, i32) {
    %c0_i32 = arith.constant 0 : i32
    %c0_i32_0 = arith.constant 0 : i32
    %c0_i32_1 = arith.constant 0 : i32
    return %c0_i32, %c0_i32_0 : i32, i32
  }
  func.func @transform_3(%arg0: i32) -> (i32, i32) {
    %c0_i32 = arith.constant 0 : i32
    %c0_i32_0 = arith.constant 0 : i32
    %c0_i32_1 = arith.constant 0 : i32
    return %c0_i32, %c0_i32_0 : i32, i32
  }
  func.func @transform_4(%arg0: i32) -> (i32, i32) {
    %c0_i32 = arith.constant 0 : i32
    %c0_i32_0 = arith.constant 0 : i32
    %c0_i32_1 = arith.constant 0 : i32
    return %c0_i32, %c0_i32_0 : i32, i32
  }
}

module attributes {stable_mosaic.version = 11 : i64} {
  func.func @_final_kernel(%arg0: i32, %arg1: memref<4x256xf32, #tpu.memory_space<vmem>>, %arg2: memref<8x4xf32, #tpu.memory_space<vmem>>, %arg3: memref<8x1xf32, #tpu.memory_space<vmem>>, %arg4: memref<8x8xf32, #tpu.memory_space<vmem>>, %arg5: memref<8x1xf32, #tpu.memory_space<vmem>>, %arg6: memref<8x256xf32, #tpu.memory_space<vmem>>) attributes {dimension_semantics = [#tpu.dimension_semantics<parallel>], iteration_bounds = array<i64: 2>, scalar_prefetch = 0 : i64, scratch_operands = 0 : i64, tpu.core_type = #tpu.core_type<tc>, window_params = [{transform_indices = @transform_0, window_bounds = array<i64: 4, 256>}, {pipeline_mode = #tpu.pipeline_mode<synchronous>, transform_indices = @transform_1, window_bounds = array<i64: 8, 4>}, {pipeline_mode = #tpu.pipeline_mode<synchronous>, transform_indices = @transform_2, window_bounds = array<i64: 8, 1>}, {pipeline_mode = #tpu.pipeline_mode<synchronous>, transform_indices = @transform_3, window_bounds = array<i64: 8, 8>}, {pipeline_mode = #tpu.pipeline_mode<synchronous>, transform_indices = @transform_4, window_bounds = array<i64: 8, 1>}, {transform_indices = @transform_5, window_bounds = array<i64: 8, 256>}]} {
    %c0 = arith.constant 0 : index
    %c0_0 = arith.constant 0 : index
    %0 = vector.load %arg2[%c0, %c0_0] : memref<8x4xf32, #tpu.memory_space<vmem>>, vector<8x4xf32>
    %c0_1 = arith.constant 0 : index
    %c0_2 = arith.constant 0 : index
    %1 = vector.load %arg1[%c0_1, %c0_2] : memref<4x256xf32, #tpu.memory_space<vmem>>, vector<4x256xf32>
    %cst = arith.constant dense<0.000000e+00> : vector<8x256xf32>
    %2 = tpu.matmul %0, %1, %cst {dimension_numbers = #tpu.dot_dimension_numbers<[1], [0], [0], [1], [0, 0, 1, 1], [], []>} : vector<8x4xf32>, vector<4x256xf32>, vector<8x256xf32> -> vector<8x256xf32>
    %c0_3 = arith.constant 0 : index
    %c0_4 = arith.constant 0 : index
    %3 = vector.load %arg3[%c0_3, %c0_4] : memref<8x1xf32, #tpu.memory_space<vmem>>, vector<8x1xf32>
    %4 = vector.broadcast %3 : vector<8x1xf32> to vector<8x256xf32>
    %5 = arith.addf %2, %4 : vector<8x256xf32>
    %cst_5 = arith.constant 0.000000e+00 : f32
    %6 = vector.broadcast %cst_5 : f32 to vector<8x256xf32>
    %7 = arith.maximumf %5, %6 : vector<8x256xf32>
    %c0_6 = arith.constant 0 : index
    %c0_7 = arith.constant 0 : index
    %8 = vector.load %arg4[%c0_6, %c0_7] : memref<8x8xf32, #tpu.memory_space<vmem>>, vector<8x8xf32>
    %cst_8 = arith.constant dense<0.000000e+00> : vector<8x256xf32>
    %9 = tpu.matmul %8, %7, %cst_8 {dimension_numbers = #tpu.dot_dimension_numbers<[1], [0], [0], [1], [0, 0, 1, 1], [], []>} : vector<8x8xf32>, vector<8x256xf32>, vector<8x256xf32> -> vector<8x256xf32>
    %c0_9 = arith.constant 0 : index
    %c0_10 = arith.constant 0 : index
    %10 = vector.load %arg5[%c0_9, %c0_10] : memref<8x1xf32, #tpu.memory_space<vmem>>, vector<8x1xf32>
    %11 = vector.broadcast %10 : vector<8x1xf32> to vector<8x256xf32>
    %12 = arith.addf %9, %11 : vector<8x256xf32>
    %cst_11 = arith.constant 0.000000e+00 : f32
    %13 = vector.broadcast %cst_11 : f32 to vector<8x256xf32>
    %14 = arith.maximumf %12, %13 : vector<8x256xf32>
    %c0_12 = arith.constant 0 : index
    %c0_13 = arith.constant 0 : index
    %15 = vector.load %arg6[%c0_12, %c0_13] : memref<8x256xf32, #tpu.memory_space<vmem>>, vector<8x256xf32>
    tpu.vector_store %arg6[%c0_12, %c0_13], %14 {strides = array<i32>} : memref<8x256xf32, #tpu.memory_space<vmem>>, vector<8x256xf32>,
    return
  }
  func.func @transform_0(%arg0: i32) -> (i32, i32) {
    %c0_i32 = arith.constant 0 : i32
    %c0_i32_0 = arith.constant 0 : i32
    return %c0_i32, %arg0 : i32, i32
  }
  func.func @transform_1(%arg0: i32) -> (i32, i32) {
    %c0_i32 = arith.constant 0 : i32
    %c0_i32_0 = arith.constant 0 : i32
    %c0_i32_1 = arith.constant 0 : i32
    return %c0_i32, %c0_i32_0 : i32, i32
  }
  func.func @transform_2(%arg0: i32) -> (i32, i32) {
    %c0_i32 = arith.constant 0 : i32
    %c0_i32_0 = arith.constant 0 : i32
    %c0_i32_1 = arith.constant 0 : i32
    return %c0_i32, %c0_i32_0 : i32, i32
  }
  func.func @transform_3(%arg0: i32) -> (i32, i32) {
    %c0_i32 = arith.constant 0 : i32
    %c0_i32_0 = arith.constant 0 : i32
    %c0_i32_1 = arith.constant 0 : i32
    return %c0_i32, %c0_i32_0 : i32, i32
  }
  func.func @transform_4(%arg0: i32) -> (i32, i32) {
    %c0_i32 = arith.constant 0 : i32
    %c0_i32_0 = arith.constant 0 : i32
    %c0_i32_1 = arith.constant 0 : i32
    return %c0_i32, %c0_i32_0 : i32, i32
  }
  func.func @transform_5(%arg0: i32) -> (i32, i32) {
    %c0_i32 = arith.constant 0 : i32
    %c0_i32_0 = arith.constant 0 : i32
    return %c0_i32, %arg0 : i32, i32
  }
}

module attributes {stable_mosaic.version = 11 : i64} {
  func.func @_stats2_kernel(%arg0: i32, %arg1: memref<4x256xf32, #tpu.memory_space<vmem>>, %arg2: memref<8x4xf32, #tpu.memory_space<vmem>>, %arg3: memref<8x1xf32, #tpu.memory_space<vmem>>, %arg4: memref<8x8xf32, #tpu.memory_space<vmem>>, %arg5: memref<8x1xf32, #tpu.memory_space<vmem>>, %arg6: memref<8x1xf32, #tpu.memory_space<vmem>>, %arg7: memref<8x1xf32, #tpu.memory_space<vmem>>) attributes {dimension_semantics = [#tpu.dimension_semantics<arbitrary>], iteration_bounds = array<i64: 2>, scalar_prefetch = 0 : i64, scratch_operands = 0 : i64, tpu.core_type = #tpu.core_type<tc>, window_params = [{transform_indices = @transform_0, window_bounds = array<i64: 4, 256>}, {pipeline_mode = #tpu.pipeline_mode<synchronous>, transform_indices = @transform_1, window_bounds = array<i64: 8, 4>}, {pipeline_mode = #tpu.pipeline_mode<synchronous>, transform_indices = @transform_2, window_bounds = array<i64: 8, 1>}, {pipeline_mode = #tpu.pipeline_mode<synchronous>, transform_indices = @transform_3, window_bounds = array<i64: 8, 8>}, {pipeline_mode = #tpu.pipeline_mode<synchronous>, transform_indices = @transform_4, window_bounds = array<i64: 8, 1>}, {pipeline_mode = #tpu.pipeline_mode<synchronous>, transform_indices = @transform_5, window_bounds = array<i64: 8, 1>}, {pipeline_mode = #tpu.pipeline_mode<synchronous>, transform_indices = @transform_6, window_bounds = array<i64: 8, 1>}]} {
    %c0_i32 = arith.constant 0 : i32
    %0 = arith.cmpi eq, %arg0, %c0_i32 : i32
    %1 = arith.extui %0 : i1 to i32
    %c0_i32_0 = arith.constant 0 : i32
    %2 = arith.cmpi ne, %1, %c0_i32_0 : i32
    scf.if %2 {
      %cst_23 = arith.constant 0.000000e+00 : f32
      %37 = vector.broadcast %cst_23 : f32 to vector<8x1xf32>
      %c0_24 = arith.constant 0 : index
      %c0_25 = arith.constant 0 : index
      %38 = vector.load %arg6[%c0_24, %c0_25] : memref<8x1xf32, #tpu.memory_space<vmem>>, vector<8x1xf32>
      tpu.vector_store %arg6[%c0_24, %c0_25], %37 {strides = array<i32>} : memref<8x1xf32, #tpu.memory_space<vmem>>, vector<8x1xf32>,
      %cst_26 = arith.constant 0.000000e+00 : f32
      %39 = vector.broadcast %cst_26 : f32 to vector<8x1xf32>
      %c0_27 = arith.constant 0 : index
      %c0_28 = arith.constant 0 : index
      %40 = vector.load %arg7[%c0_27, %c0_28] : memref<8x1xf32, #tpu.memory_space<vmem>>, vector<8x1xf32>
      tpu.vector_store %arg7[%c0_27, %c0_28], %39 {strides = array<i32>} : memref<8x1xf32, #tpu.memory_space<vmem>>, vector<8x1xf32>,
    } else {
    }
    %c0 = arith.constant 0 : index
    %c0_1 = arith.constant 0 : index
    %3 = vector.load %arg2[%c0, %c0_1] : memref<8x4xf32, #tpu.memory_space<vmem>>, vector<8x4xf32>
    %c0_2 = arith.constant 0 : index
    %c0_3 = arith.constant 0 : index
    %4 = vector.load %arg1[%c0_2, %c0_3] : memref<4x256xf32, #tpu.memory_space<vmem>>, vector<4x256xf32>
    %cst = arith.constant dense<0.000000e+00> : vector<8x256xf32>
    %5 = tpu.matmul %3, %4, %cst {dimension_numbers = #tpu.dot_dimension_numbers<[1], [0], [0], [1], [0, 0, 1, 1], [], []>} : vector<8x4xf32>, vector<4x256xf32>, vector<8x256xf32> -> vector<8x256xf32>
    %c0_4 = arith.constant 0 : index
    %c0_5 = arith.constant 0 : index
    %6 = vector.load %arg3[%c0_4, %c0_5] : memref<8x1xf32, #tpu.memory_space<vmem>>, vector<8x1xf32>
    %7 = vector.broadcast %6 : vector<8x1xf32> to vector<8x256xf32>
    %8 = arith.addf %5, %7 : vector<8x256xf32>
    %cst_6 = arith.constant 0.000000e+00 : f32
    %9 = vector.broadcast %cst_6 : f32 to vector<8x256xf32>
    %10 = arith.maximumf %8, %9 : vector<8x256xf32>
    %c0_7 = arith.constant 0 : index
    %c0_8 = arith.constant 0 : index
    %11 = vector.load %arg4[%c0_7, %c0_8] : memref<8x8xf32, #tpu.memory_space<vmem>>, vector<8x8xf32>
    %cst_9 = arith.constant dense<0.000000e+00> : vector<8x256xf32>
    %12 = tpu.matmul %11, %10, %cst_9 {dimension_numbers = #tpu.dot_dimension_numbers<[1], [0], [0], [1], [0, 0, 1, 1], [], []>} : vector<8x8xf32>, vector<8x256xf32>, vector<8x256xf32> -> vector<8x256xf32>
    %c0_10 = arith.constant 0 : index
    %c0_11 = arith.constant 0 : index
    %13 = vector.load %arg5[%c0_10, %c0_11] : memref<8x1xf32, #tpu.memory_space<vmem>>, vector<8x1xf32>
    %14 = vector.broadcast %13 : vector<8x1xf32> to vector<8x256xf32>
    %15 = arith.addf %12, %14 : vector<8x256xf32>
    %c256_i32 = arith.constant 256 : i32
    %16 = arith.muli %arg0, %c256_i32 : i32
    %17 = tpu.iota {dimensions = array<i32: 1>} : vector<1x256xi32>
    %18 = vector.broadcast %16 : i32 to vector<1x256xi32>
    %19 = arith.addi %18, %17 : vector<1x256xi32>
    %c512_i32 = arith.constant 512 : i32
    %20 = vector.broadcast %c512_i32 : i32 to vector<1x256xi32>
    %21 = arith.cmpi slt, %19, %20 : vector<1x256xi32>
    %cst_12 = arith.constant 0.000000e+00 : f32
    %22 = vector.shape_cast %21 : vector<1x256xi1> to vector<1x256xi1>
    %23 = vector.broadcast %22 : vector<1x256xi1> to vector<8x256xi1>
    %24 = vector.broadcast %cst_12 : f32 to vector<8x256xf32>
    %25 = arith.select %23, %15, %24 : vector<8x256xi1>, vector<8x256xf32>
    %c0_13 = arith.constant 0 : index
    %c0_14 = arith.constant 0 : index
    %26 = vector.load %arg6[%c0_13, %c0_14] : memref<8x1xf32, #tpu.memory_space<vmem>>, vector<8x1xf32>
    %cst_15 = arith.constant dense<0.000000e+00> : vector<8xf32>
    %27 = vector.multi_reduction <add>, %25, %cst_15 [1] : vector<8x256xf32> to vector<8xf32>
    %28 = vector.shape_cast %27 : vector<8xf32> to vector<8x1xf32>
    %29 = arith.addf %26, %28 : vector<8x1xf32>
    %c0_16 = arith.constant 0 : index
    %c0_17 = arith.constant 0 : index
    %30 = vector.load %arg6[%c0_16, %c0_17] : memref<8x1xf32, #tpu.memory_space<vmem>>, vector<8x1xf32>
    tpu.vector_store %arg6[%c0_16, %c0_17], %29 {strides = array<i32>} : memref<8x1xf32, #tpu.memory_space<vmem>>, vector<8x1xf32>,
    %c0_18 = arith.constant 0 : index
    %c0_19 = arith.constant 0 : index
    %31 = vector.load %arg7[%c0_18, %c0_19] : memref<8x1xf32, #tpu.memory_space<vmem>>, vector<8x1xf32>
    %32 = arith.mulf %25, %25 : vector<8x256xf32>
    %cst_20 = arith.constant dense<0.000000e+00> : vector<8xf32>
    %33 = vector.multi_reduction <add>, %32, %cst_20 [1] : vector<8x256xf32> to vector<8xf32>
    %34 = vector.shape_cast %33 : vector<8xf32> to vector<8x1xf32>
    %35 = arith.addf %31, %34 : vector<8x1xf32>
    %c0_21 = arith.constant 0 : index
    %c0_22 = arith.constant 0 : index
    %36 = vector.load %arg7[%c0_21, %c0_22] : memref<8x1xf32, #tpu.memory_space<vmem>>, vector<8x1xf32>
    tpu.vector_store %arg7[%c0_21, %c0_22], %35 {strides = array<i32>} : memref<8x1xf32, #tpu.memory_space<vmem>>, vector<8x1xf32>,
    return
  }
  func.func @transform_0(%arg0: i32) -> (i32, i32) {
    %c0_i32 = arith.constant 0 : i32
    %c0_i32_0 = arith.constant 0 : i32
    return %c0_i32, %arg0 : i32, i32
  }
  func.func @transform_1(%arg0: i32) -> (i32, i32) {
    %c0_i32 = arith.constant 0 : i32
    %c0_i32_0 = arith.constant 0 : i32
    %c0_i32_1 = arith.constant 0 : i32
    return %c0_i32, %c0_i32_0 : i32, i32
  }
  func.func @transform_2(%arg0: i32) -> (i32, i32) {
    %c0_i32 = arith.constant 0 : i32
    %c0_i32_0 = arith.constant 0 : i32
    %c0_i32_1 = arith.constant 0 : i32
    return %c0_i32, %c0_i32_0 : i32, i32
  }
  func.func @transform_3(%arg0: i32) -> (i32, i32) {
    %c0_i32 = arith.constant 0 : i32
    %c0_i32_0 = arith.constant 0 : i32
    %c0_i32_1 = arith.constant 0 : i32
    return %c0_i32, %c0_i32_0 : i32, i32
  }
  func.func @transform_4(%arg0: i32) -> (i32, i32) {
    %c0_i32 = arith.constant 0 : i32
    %c0_i32_0 = arith.constant 0 : i32
    %c0_i32_1 = arith.constant 0 : i32
    return %c0_i32, %c0_i32_0 : i32, i32
  }
  func.func @transform_5(%arg0: i32) -> (i32, i32) {
    %c0_i32 = arith.constant 0 : i32
    %c0_i32_0 = arith.constant 0 : i32
    %c0_i32_1 = arith.constant 0 : i32
    return %c0_i32, %c0_i32_0 : i32, i32
  }
  func.func @transform_6(%arg0: i32) -> (i32, i32) {
    %c0_i32 = arith.constant 0 : i32
    %c0_i32_0 = arith.constant 0 : i32
    %c0_i32_1 = arith.constant 0 : i32
    return %c0_i32, %c0_i32_0 : i32, i32
  }
}

</mosaic_0001>

<bundles_post_ra>
// kernel: feature_extraction_forward.5
= control target key start
LH: loop header
LB: loop body
LE: loop exit
PB: predicated region body
PF: predicated region fallthrough
CT: control target
= control target key end

     0   :  { %s468_s18 = smov 0   ;;  %s501_s0 = inlined_call_operand.vmem [shape: f32[4,512], index: 0, kind: input, shape index: {}]   ;;  %s502_s1 = inlined_call_operand.vmem [shape: f32[8,4], index: 1, kind: input, shape index: {}]   ;;  %s503_s2 = inlined_call_operand.vmem [shape: f32[8,1], index: 2, kind: input, shape index: {}]   ;;  %s504_s3 = inlined_call_operand.vmem [shape: f32[8,8], index: 3, kind: input, shape index: {}]   ;;  %s505_s4 = inlined_call_operand.vmem [shape: f32[8,1], index: 4, kind: input, shape index: {}]   ;;  %s506_s5 = inlined_call_operand.vmem [shape: f32[8,512], index: 5, kind: output, shape index: {}]  }
   0x1 LB: > { %s402_s19 = sadd.s32 4294967295, %s435_s18   ;;  %p406_p0 = scmp.ge.s32.totalorder %s435_s18, 1  ;;  %s435_s18 = sphi %s468_s18, %s15_s18  }
   0x2   : > { %p188_p1 = scmp.lt.s32.totalorder %s435_s18, 3 }
   0x4   : > { %p189_p2 = pnand %p406_p0, %p188_p1 }
   0x5   : > { %s407_s20 = sshll.u32 (!%p189_p2), %s402_s19, 1 }
   0x6   : > { %192 = sbr.rel (%p189_p2) target bundleno = 293 (0x125), region = 40  ;;  %p217_p3 = scmp.lt.s32.totalorder (!%p189_p2), %s407_s20, 3 }
   0xb   : > { %v230_v0 = vld [vmem:[%s503_s2] sm:$0xff]  ;;  %v437_v1 = vmov 0   ;;  %s508_s20 = smov (!%p217_p3, %s407_s20), 3  ;;  %vm244_vm0 = vcmask 1043456   ;;  %vm240_vm1 = vcmask 31744   ;;  %vm298_vm2 = vcmask 64512  }
   0xc   : > { %428 = vset.pattern.permute.xlu0 %v437_v1  ;;  %s408_s23 = sshll.u32 %s508_s20, 2  ;;  %v292_v3 = vld [vmem:[%s505_s4] sm:$0xff]  ;;  %s410_s8 = sshll.u32 %s508_s20, 3 }
   0xd   : > { %233 = vperm.xlu0 %428, %v230_v0   ;;  %s220_s26 = scalar_lea.vmem %s501_s0, %s408_s23  ;;  %v228_v4 = vld [vmem:[%s502_s1] sm:$0xff]  ;;  %s226_s11 = scalar_lea.vmem %s506_s5, %s410_s8 }
   0xe   : > { %v229_v2 = vld [vmem:[%s220_s26] sm:$0xff] }
   0xf   : > { %237 = vst [vmem:[#allocation1] ss:$2 sm:$0xff] %v229_v2  ;;  %v291_v14 = vld [vmem:[%s504_s3] sm:$0xff] }
  0x15   : > { %295 = vperm.xlu0 %428, %v292_v3  }
  0x16   : > { %v238_v5 = vld.sshfl [vmem:[#allocation1] sm:$0xff pattern:$0x75316420]  ;;  %v239_v6 = vld.sshfl [vmem:[#allocation1 + $0x8] sm:$0xff pattern:$0x75316420] }
  0x17   : > { %411 = vmatpush.msk.msra.mxu0 %vm244_vm0, %v238_v5  ;;  %413 = vmatpush.msk.msra.mxu1 %vm244_vm0, %v239_v6 }
  0x18   : > { %412 = vmatmul.msk.f32.vlgmr.msra.gmra.mxu0 %vm240_vm1, %v228_v4  ;;  %414 = vmatmul.msk.f32.vlgmr.msra.gmra.mxu1 %vm240_vm1, %v228_v4 }
  0x7f   : > { %v234_v7 = vpop.permute.xlu0 %233 }
  0x87   : > { %v296_v15 = vpop.permute.xlu0 %295 }
  0x95   : > { %v266_v8 = vpop.f32.mrf.mxu0  ;;  %v286_v9 = vpop.f32.mrf.mxu1 }
  0x96   : > { %v267_v10 = vadd.f32 %v266_v8, %v234_v7  ;;  %v287_v11 = vadd.f32 %v286_v9, %v234_v7 }
  0x98   : > { %v289_v12 = vmax.f32 %v267_v10, 0.0  ;;  %v290_v13 = vmax.f32 %v287_v11, 0.0 }
  0x9a   : > { %317 = vmatpush.msra.mxu2 %v289_v12  ;;  %337 = vmatpush.msra.mxu3 %v290_v13 }
  0x9b   : > { %415 = vmatmul.msk.f32.vlgmr.msra.gmra.mxu2 %vm298_vm2, %v291_v14  ;;  %416 = vmatmul.msk.f32.vlgmr.msra.gmra.mxu3 %vm298_vm2, %v291_v14 }
 0x11e   : > { %v319_v16 = vpop.f32.mrf.mxu2  ;;  %v339_v17 = vpop.f32.mrf.mxu3 }
 0x11f   : > { %v320_v18 = vadd.f32 %v319_v16, %v296_v15  ;;  %v340_v19 = vadd.f32 %v339_v17, %v296_v15 }
 0x121   : > { %v342_v20 = vmax.f32 %v320_v18, 0.0  ;;  %v343_v21 = vmax.f32 %v340_v19, 0.0 }
 0x123   : > { %344 = vst [vmem:[%s226_s11] sm:$0xff] %v342_v20 }
 0x124   : > { %345 = vst [vmem:[%s226_s11 + $0x8] sm:$0xff] %v343_v21 }
 0x125 PF: > { %s15_s18 = sadd.s32 1, %s435_s18  }
 0x126   : > { %p12_p4 = scmp.ge.s32.totalorder %s15_s18, 4  }
 0x128   :  { %14 = sbr.rel (!%p12_p4) target bundleno = 1 (0x1), region = 70 }

// kernel: feature_extraction_forward.3
= control target key start
LH: loop header
LB: loop body
LE: loop exit
PB: predicated region body
PF: predicated region fallthrough
CT: control target
= control target key end

     0   :  { %s375_s15 = smov 0   ;;  %s418_s0 = inlined_call_operand.vmem [shape: f32[4,512], index: 0, kind: input, shape index: {}]   ;;  %s419_s1 = inlined_call_operand.vmem [shape: f32[8,4], index: 1, kind: input, shape index: {}]   ;;  %s420_s2 = inlined_call_operand.vmem [shape: f32[8,1], index: 2, kind: input, shape index: {}]   ;;  %s421_s3 = inlined_call_operand.vmem [shape: f32[8,1], index: 3, kind: output, shape index: {0}]   ;;  %s422_s4 = inlined_call_operand.vmem [shape: f32[8,1], index: 4, kind: output, shape index: {1}]  }
   0x1 LB: > { %s381_s16 = sadd.s32 4294967295, %s346_s15   ;;  %p318_p0 = scmp.ge.s32.totalorder %s346_s15, 1  ;;  %s346_s15 = sphi %s375_s15, %s15_s15  }
   0x2   : > { %p156_p1 = scmp.lt.s32.totalorder %s346_s15, 3 }
   0x4   : > { %p157_p2 = pnand %p318_p0, %p156_p1 }
   0x5   : > { %s319_s17 = sshll.u32 (!%p157_p2), %s381_s16, 1  ;;  %p321_p4 = scmp.ne.s32.totalorder (!%p157_p2), %s381_s16, 0 }
   0x6   : > { %160 = sbr.rel (%p157_p2) target bundleno = 281 (0x119), region = 32  ;;  %p178_p3 = scmp.lt.s32.totalorder (!%p157_p2), %s319_s17, 3 }
   0xb   : > { %s424_s17 = smov (!%p178_p3, %s319_s17), 3  ;;  %186 = sbr.rel (%p321_p4) target bundleno = 19 (0x13), region = 36 }
   0xc   : > { %s320_s18 = sshll.u32 %s424_s17, 2 }
   0xd   : > { %s181_s21 = scalar_lea.vmem %s418_s0, %s320_s18 }
  0x10   : > { %vm187_vm0 = vcmask 7168   ;;  %v348_v0 = vmov 0.0  }
  0x11   : > { %188 = vst.msk [vmem:[%s421_s3] sm:$0xff] %vm187_vm0, %v348_v0 }
  0x12   : > { %189 = vst.msk [vmem:[%s422_s4] sm:$0xff] %vm187_vm0, %v348_v0 }
  0x13 PF: > { %v191_v1 = vld [vmem:[%s181_s21] sm:$0xff]  ;;  %v349_v3 = vmov 0   ;;  %vm206_vm1 = vcmask 1043456   ;;  %vm202_vm2 = vcmask 31744   ;;  %v252_v7 = vlaneseq  ;;  %s326_s30 = sshll.u32 %s381_s16, 8 }
  0x14   : > { %v192_v2 = vld [vmem:[%s420_s2] sm:$0xff]  ;;  %199 = vst [vmem:[#allocation1] ss:$2 sm:$0xff] %v191_v1  ;;  %339 = vset.pattern.permute.xlu0 %v349_v3  ;;  %v255_v10 = vstv %s326_s30  ;;  %vm271_vm5 = vcmask 7168  }
  0x15   : > { %195 = vperm.xlu0 %339, %v192_v2   ;;  %v190_v4 = vld [vmem:[%s419_s1] sm:$0xff]  ;;  %v253_v8 = vand.u32 127, %v252_v7 }
  0x17   : > { %v254_v9 = vadd.s32 128, %v253_v8  ;;  %v256_v11 = vadd.s32 %v255_v10, %v253_v8 }
  0x18   : > { %v266_v24 = vld [vmem:[%s421_s3] sm:$0xff] }
  0x19   : > { %v257_v12 = vadd.s32 %v255_v10, %v254_v9  ;;  %vm258_vm3 = vcmp.lt.s32.totalorder %v256_v11, 512  ;;  %v273_v26 = vld [vmem:[%s422_s4] sm:$0xff] }
  0x1b   : > { %v200_v5 = vld.sshfl [vmem:[#allocation1] sm:$0xff pattern:$0x75316420]  ;;  %v201_v6 = vld.sshfl [vmem:[#allocation1 + $0x8] sm:$0xff pattern:$0x75316420] }
  0x1c   : > { %322 = vmatpush.msk.msra.mxu0 %vm206_vm1, %v200_v5  ;;  %324 = vmatpush.msk.msra.mxu1 %vm206_vm1, %v201_v6  ;;  %vm259_vm4 = vcmp.lt.s32.totalorder %v257_v12, 512 }
  0x1d   : > { %323 = vmatmul.msk.f32.vlgmr.msra.gmra.mxu0 %vm202_vm2, %v190_v4  ;;  %325 = vmatmul.msk.f32.vlgmr.msra.gmra.mxu1 %vm202_vm2, %v190_v4 }
  0x87   : > { %v196_v13 = vpop.permute.xlu0 %195 }
  0x9a   : > { %v228_v14 = vpop.f32.mrf.mxu0  ;;  %v248_v15 = vpop.f32.mrf.mxu1 }
  0x9b   : > { %v229_v16 = vadd.f32 %v228_v14, %v196_v13  ;;  %v249_v17 = vadd.f32 %v248_v15, %v196_v13 }
  0x9d   : > { %v264_v18 = vsel %vm258_vm3, %v229_v16, 0.0  ;;  %v265_v19 = vsel %vm259_vm4, %v249_v17, 0.0 }
  0x9e   : > { %v267_v20 = vadd.f32 %v265_v19, %v264_v18  ;;  %v274_v21 = vmul.f32 %v264_v18, %v264_v18  ;;  %v275_v22 = vmul.f32 %v265_v19, %v265_v19 }
  0xa0   : > { %268 = vadd.xlane.f32.xlu0 %v267_v20  ;;  %v276_v23 = vadd.f32 %v275_v22, %v274_v21 }
  0xa2   : > { %277 = vadd.xlane.f32.xlu1 %v276_v23 }
 0x113   : > { %v269_v25 = vpop.xlane.xlu0 %268 }
 0x114   : > { %v270_v27 = vadd.f32 %v269_v25, %v266_v24 }
 0x115   : > { %v278_v28 = vpop.xlane.xlu1 %277 }
 0x116   : > { %272 = vst.msk [vmem:[%s421_s3] sm:$0xff] %vm271_vm5, %v270_v27  ;;  %v279_v29 = vadd.f32 %v278_v28, %v273_v26 }
 0x118   : > { %280 = vst.msk [vmem:[%s422_s4] sm:$0xff] %vm271_vm5, %v279_v29 }
 0x119 PF: > { %s15_s15 = sadd.s32 1, %s346_s15  }
 0x11a   : > { %p12_p5 = scmp.ge.s32.totalorder %s15_s15, 4  }
 0x11c   :  { %14 = sbr.rel (!%p12_p5) target bundleno = 1 (0x1), region = 70 }

// kernel: feature_extraction_forward.4
= control target key start
LH: loop header
LB: loop body
LE: loop exit
PB: predicated region body
PF: predicated region fallthrough
CT: control target
= control target key end

     0   :  { %s494_s21 = smov 0   ;;  %s543_s0 = inlined_call_operand.vmem [shape: f32[4,512], index: 0, kind: input, shape index: {}]   ;;  %s544_s1 = inlined_call_operand.vmem [shape: f32[8,4], index: 1, kind: input, shape index: {}]   ;;  %s545_s2 = inlined_call_operand.vmem [shape: f32[8,1], index: 2, kind: input, shape index: {}]   ;;  %s546_s3 = inlined_call_operand.vmem [shape: f32[8,8], index: 3, kind: input, shape index: {}]   ;;  %s547_s4 = inlined_call_operand.vmem [shape: f32[8,1], index: 4, kind: input, shape index: {}]   ;;  %s548_s5 = inlined_call_operand.vmem [shape: f32[8,1], index: 5, kind: output, shape index: {0}]   ;;  %s549_s6 = inlined_call_operand.vmem [shape: f32[8,1], index: 6, kind: output, shape index: {1}]  }
   0x1 LB: > { %s500_s22 = sadd.s32 4294967295, %s455_s21   ;;  %p425_p0 = scmp.ge.s32.totalorder %s455_s21, 1  ;;  %s455_s21 = sphi %s494_s21, %s17_s21  }
   0x2   : > { %p206_p1 = scmp.lt.s32.totalorder %s455_s21, 3 }
   0x4   : > { %p207_p2 = pnand %p425_p0, %p206_p1 }
   0x5   : > { %s426_s23 = sshll.u32 (!%p207_p2), %s500_s22, 1  ;;  %p428_p4 = scmp.ne.s32.totalorder (!%p207_p2), %s500_s22, 0 }
   0x6   : > { %210 = sbr.rel (%p207_p2) target bundleno = 424 (0x1a8), region = 40  ;;  %p232_p3 = scmp.lt.s32.totalorder (!%p207_p2), %s426_s23, 3 }
   0xb   : > { %s551_s23 = smov (!%p232_p3, %s426_s23), 3  ;;  %240 = sbr.rel (%p428_p4) target bundleno = 19 (0x13), region = 44 }
   0xc   : > { %s427_s24 = sshll.u32 %s551_s23, 2 }
   0xd   : > { %s235_s27 = scalar_lea.vmem %s543_s0, %s427_s24 }
  0x10   : > { %vm241_vm0 = vcmask 7168   ;;  %v457_v0 = vmov 0.0  }
  0x11   : > { %242 = vst.msk [vmem:[%s548_s5] sm:$0xff] %vm241_vm0, %v457_v0 }
  0x12   : > { %243 = vst.msk [vmem:[%s549_s6] sm:$0xff] %vm241_vm0, %v457_v0 }
  0x13 PF: > { %v245_v1 = vld [vmem:[%s235_s27] sm:$0xff]  ;;  %v458_v3 = vmov 0   ;;  %vm260_vm1 = vcmask 1043456   ;;  %vm256_vm2 = vcmask 31744   ;;  %vm314_vm3 = vcmask 64512   ;;  %s435_s16 = sshll.u32 %s500_s22, 8 }
  0x14   : > { %v246_v2 = vld [vmem:[%s545_s2] sm:$0xff]  ;;  %253 = vst [vmem:[#allocation1] ss:$2 sm:$0xff] %v245_v1  ;;  %448 = vset.pattern.permute.xlu0 %v458_v3  ;;  %v359_v16 = vlaneseq  ;;  %v362_v19 = vstv %s435_s16  ;;  %vm378_vm6 = vcmask 7168  }
  0x15   : > { %249 = vperm.xlu0 %448, %v246_v2   ;;  %v244_v4 = vld [vmem:[%s544_s1] sm:$0xff] }
  0x16   : > { %v308_v5 = vld [vmem:[%s547_s4] sm:$0xff]  ;;  %v360_v17 = vand.u32 127, %v359_v16 }
  0x17   : > { %v307_v15 = vld [vmem:[%s546_s3] sm:$0xff] }
  0x18   : > { %v361_v18 = vadd.s32 128, %v360_v17  ;;  %v363_v20 = vadd.s32 %v362_v19, %v360_v17  ;;  %v373_v33 = vld [vmem:[%s548_s5] sm:$0xff] }
  0x19   : > { %v380_v36 = vld [vmem:[%s549_s6] sm:$0xff] }
  0x1a   : > { %v364_v21 = vadd.s32 %v362_v19, %v361_v18  ;;  %vm365_vm4 = vcmp.lt.s32.totalorder %v363_v20, 512 }
  0x1b   : > { %v254_v6 = vld.sshfl [vmem:[#allocation1] sm:$0xff pattern:$0x75316420]  ;;  %v255_v7 = vld.sshfl [vmem:[#allocation1 + $0x8] sm:$0xff pattern:$0x75316420] }
  0x1c   : > { %429 = vmatpush.msk.msra.mxu0 %vm260_vm1, %v254_v6  ;;  %431 = vmatpush.msk.msra.mxu1 %vm260_vm1, %v255_v7  ;;  %vm366_vm5 = vcmp.lt.s32.totalorder %v364_v21, 512 }
  0x1d   : > { %430 = vmatmul.msk.f32.vlgmr.msra.gmra.mxu0 %vm256_vm2, %v244_v4  ;;  %432 = vmatmul.msk.f32.vlgmr.msra.gmra.mxu1 %vm256_vm2, %v244_v4 }
  0x1e   : > { %311 = vperm.xlu0 %448, %v308_v5  }
  0x87   : > { %v250_v8 = vpop.permute.xlu0 %249 }
  0x90   : > { %v312_v22 = vpop.permute.xlu0 %311 }
  0x9a   : > { %v282_v9 = vpop.f32.mrf.mxu0  ;;  %v302_v10 = vpop.f32.mrf.mxu1 }
  0x9b   : > { %v283_v11 = vadd.f32 %v282_v9, %v250_v8  ;;  %v303_v12 = vadd.f32 %v302_v10, %v250_v8 }
  0x9d   : > { %v305_v13 = vmax.f32 %v283_v11, 0.0  ;;  %v306_v14 = vmax.f32 %v303_v12, 0.0 }
  0x9f   : > { %333 = vmatpush.msra.mxu2 %v305_v13  ;;  %353 = vmatpush.msra.mxu3 %v306_v14 }
  0xa0   : > { %433 = vmatmul.msk.f32.vlgmr.msra.gmra.mxu2 %vm314_vm3, %v307_v15  ;;  %434 = vmatmul.msk.f32.vlgmr.msra.gmra.mxu3 %vm314_vm3, %v307_v15 }
 0x123   : > { %v335_v23 = vpop.f32.mrf.mxu2  ;;  %v355_v24 = vpop.f32.mrf.mxu3 }
 0x124   : > { %v336_v25 = vadd.f32 %v335_v23, %v312_v22  ;;  %v356_v26 = vadd.f32 %v355_v24, %v312_v22 }
 0x126   : > { %v371_v27 = vsel %vm365_vm4, %v336_v25, 0.0  ;;  %v372_v28 = vsel %vm366_vm5, %v356_v26, 0.0 }
 0x127   : > { %v374_v29 = vadd.f32 %v372_v28, %v371_v27  ;;  %v381_v30 = vmul.f32 %v371_v27, %v371_v27  ;;  %v382_v31 = vmul.f32 %v372_v28, %v372_v28 }
 0x129   : > { %375 = vadd.xlane.f32.xlu1 %v374_v29  ;;  %v383_v32 = vadd.f32 %v382_v31, %v381_v30 }
 0x131   : > { %384 = vadd.xlane.f32.xlu1 %v383_v32 }
 0x19c   : > { %v376_v34 = vpop.xlane.xlu1 %375 }
 0x19d   : > { %v377_v35 = vadd.f32 %v376_v34, %v373_v33 }
 0x19f   : > { %379 = vst.msk [vmem:[%s548_s5] sm:$0xff] %vm378_vm6, %v377_v35 }
 0x1a4   : > { %v385_v37 = vpop.xlane.xlu1 %384 }
 0x1a5   : > { %v386_v38 = vadd.f32 %v385_v37, %v380_v36 }
 0x1a7   : > { %387 = vst.msk [vmem:[%s549_s6] sm:$0xff] %vm378_vm6, %v386_v38 }
 0x1a8 PF: > { %s17_s21 = sadd.s32 1, %s455_s21  }
 0x1a9   : > { %p14_p5 = scmp.ge.s32.totalorder %s17_s21, 4  }
 0x1ab   :  { %16 = sbr.rel (!%p14_p5) target bundleno = 1 (0x1), region = 78 }

</bundles_post_ra>
